<compile_context>
chip_gen: v7x
topology: tpu7x:2x2x1
jax: 0.10.0
libtpu: 0.0.40
codegen_flags: <defaults>
</compile_context>

<pallas_src>
import functools
import math

import jax
import jax.numpy as jnp
from jax.experimental import pallas as pl
from jax.experimental.pallas import tpu as pltpu


def _addnorm_kernel(x1_ref, x2_ref, gb_ref, o_ref, *, eps):
    # Elementwise add + LayerNorm over the lane (last) axis; stats in f32.
    x = x1_ref[...].astype(jnp.float32) + x2_ref[...].astype(jnp.float32)
    inv_d = 1.0 / x.shape[-1]
    mean = jnp.sum(x, axis=-1, keepdims=True) * inv_d
    xc = x - mean
    # Two-pass variance on the VMEM-resident tile (numerically robust).
    var = jnp.sum(xc * xc, axis=-1, keepdims=True) * inv_d
    inv_std = jax.lax.rsqrt(var + eps)
    gamma = gb_ref[0:1, :]   # (1, d_model), already f32
    beta = gb_ref[1:2, :]    # (1, d_model), already f32
    o_ref[...] = (xc * inv_std * gamma + beta).astype(o_ref.dtype)


def _cdiv(a, b):
    return -(-a // b)


def _round_up(x, m):
    return ((x + m - 1) // m) * m


def _per_row_bytes(d_model, itemsize):
    # Pipelined working set per row: x1/x2/out double-buffered in the input
    # dtype (3 arrays x 2 buffers) + ~4 f32 intermediates inside the body.
    return 6 * d_model * itemsize + 4 * d_model * 4


def _vmem_budget_bytes():
    """~35% of this generation's VMEM for the pipelined working set."""
    try:
        cap = int(pltpu.get_tpu_info().vmem_capacity_bytes)
    except Exception:
        cap = 64 * 1024 * 1024  # conservative fallback (v7x per-TC VMEM)
    # v5e/v6e (128 MiB): ~44.8 MiB; v7x (64 MiB/TC): ~22.4 MiB. Cap at 48 MiB
    # so we stay safe even if the query reports a whole-chip number.
    return int(max(16 << 20, min(int(0.35 * cap), 48 << 20)))


def _pick_row_tile(rows, d_model, itemsize, budget_bytes):
    """Pick a large, sublane-aligned row tile; even grid steps when tiled."""
    sublane = max(8, 32 // max(1, itemsize))  # 8 f32 / 16 bf16 / 32 int8
    per_row = _per_row_bytes(d_model, itemsize)
    budget_tile = max(sublane, min(2048, budget_bytes // per_row))
    budget_tile = max(sublane, (budget_tile // sublane) * sublane)
    rows_ceil = _round_up(rows, sublane)

    # Small inputs: a single full-extent block (legal for any row count,
    # no boundary masking, no pipeline overhead).
    if rows_ceil <= budget_tile and rows_ceil < 1024:
        return rows

    # Tiled: choose an EVEN number of near-equal steps so both v7x
    # TensorCores get balanced work; v5e/v6e just see large tiles.
    steps_min = _cdiv(rows_ceil, budget_tile)
    steps = max(2, steps_min + (steps_min % 2))
    return min(rows_ceil, _round_up(_cdiv(rows, steps), sublane))


def add_norm(x1, x2, gamma, beta, *, eps=1e-5, row_tile=None):
    """LayerNorm(x1 + x2) over the last dim, as a Pallas TPU kernel."""
    assert x1.shape == x2.shape
    orig_shape = x1.shape
    d_model = orig_shape[-1]
    rows = math.prod(orig_shape[:-1]) if len(orig_shape) > 1 else 1
    itemsize = x1.dtype.itemsize
    sublane = max(8, 32 // max(1, itemsize))

    budget_bytes = _vmem_budget_bytes()
    if row_tile is None:
        row_tile = _pick_row_tile(rows, d_model, itemsize, budget_bytes)
    elif row_tile < rows:
        # User override: keep it sublane-aligned unless it covers all rows.
        row_tile = max(sublane, _round_up(row_tile, sublane))
    else:
        row_tile = rows

    x1f = x1.reshape(rows, d_model)
    x2f = x2.reshape(rows, d_model)

    # Cast + stack params once here (tiny, VMEM-resident, constant index_map)
    # so the kernel never re-casts them and only one param stream is DMA'd.
    gb = jnp.stack(
        [gamma.reshape(d_model).astype(jnp.float32),
         beta.reshape(d_model).astype(jnp.float32)],
        axis=0,
    )  # (2, d_model)

    grid = (_cdiv(rows, row_tile),)
    # Ragged final block (if any) is boundary-masked: rows are independent,
    # so garbage boundary rows never contaminate valid rows, and their
    # writes are masked. No jnp.pad / output slice -> no extra HBM traffic.
    row_spec = pl.BlockSpec((row_tile, d_model), lambda i: (i, 0))
    param_spec = pl.BlockSpec((2, d_model), lambda i: (0, 0))

    # VMEM limit derived from the SAME working-set model as the tile budget.
    pipelined_bytes = row_tile * _per_row_bytes(d_model, itemsize)
    param_bytes = 2 * 2 * d_model * 4
    vmem_limit = int(min(60 << 20,
                         max(16 << 20, pipelined_bytes + param_bytes + (8 << 20))))

    cost = pl.CostEstimate(
        flops=9 * rows * d_model,
        transcendentals=rows,
        bytes_accessed=3 * rows * d_model * itemsize + 2 * d_model * 4,
    )

    out = pl.pallas_call(
        functools.partial(_addnorm_kernel, eps=eps),
        out_shape=jax.ShapeDtypeStruct((rows, d_model), x1.dtype),
        grid_spec=pl.GridSpec(
            grid=grid,
            in_specs=[row_spec, row_spec, param_spec],
            out_specs=row_spec,
        ),
        compiler_params=pltpu.CompilerParams(
            dimension_semantics=("parallel",),
            vmem_limit_bytes=vmem_limit,
        ),
        cost_estimate=cost,
    )(x1f, x2f, gb)

    return out.reshape(orig_shape)


def _reference(x1, x2, gamma, beta, eps=1e-5):
    s = x1 + x2
    mean = jnp.mean(s, axis=-1, keepdims=True)
    var = jnp.mean((s - mean) ** 2, axis=-1, keepdims=True)
    return (s - mean) / jnp.sqrt(var + eps) * gamma + beta


if __name__ == "__main__":
    key = jax.random.PRNGKey(0)
    k1, k2, k3, k4 = jax.random.split(key, 4)

    batch, seq, d_model = 2, 8, 32
    x1 = jax.random.normal(k1, (batch, seq, d_model), dtype=jnp.float32)
    x2 = jax.random.normal(k2, (batch, seq, d_model), dtype=jnp.float32)

    # Non-trivial (deterministic) affine params to exercise gamma/beta path.
    gamma = 1.0 + 0.1 * jnp.arange(d_model, dtype=jnp.float32)
    beta = 0.05 * jnp.arange(d_model, dtype=jnp.float32)

    out = add_norm(x1, x2, gamma, beta)
    out = jax.block_until_ready(out)
    ref = _reference(x1, x2, gamma, beta)
    assert jnp.allclose(out, ref, atol=1e-5, rtol=1e-5), "mismatch vs reference"

    # Ragged-row check: rows=14 with a forced 8-row tile exercises the
    # boundary-masked final block (replaces the old jnp.pad path).
    x1r = jax.random.normal(k3, (2, 7, d_model), dtype=jnp.float32)
    x2r = jax.random.normal(k4, (2, 7, d_model), dtype=jnp.float32)
    out_r = jax.block_until_ready(add_norm(x1r, x2r, gamma, beta, row_tile=8))
    ref_r = _reference(x1r, x2r, gamma, beta)
    assert jnp.allclose(out_r, ref_r, atol=1e-5, rtol=1e-5), "ragged mismatch"

    print("KERNEL_OK")
</pallas_src>

<mosaic_0001>
module attributes {stable_mosaic.version = 11 : i64} {
  func.func @_addnorm_kernel(%arg0: i32, %arg1: memref<16x32xf32, #tpu.memory_space<vmem>>, %arg2: memref<16x32xf32, #tpu.memory_space<vmem>>, %arg3: memref<2x32xf32, #tpu.memory_space<vmem>>, %arg4: memref<16x32xf32, #tpu.memory_space<vmem>>) attributes {dimension_semantics = [#tpu.dimension_semantics<parallel>], iteration_bounds = array<i64: 1>, scalar_prefetch = 0 : i64, scratch_operands = 0 : i64, tpu.core_type = #tpu.core_type<tc>, window_params = [{transform_indices = @transform_0, window_bounds = array<i64: 16, 32>}, {transform_indices = @transform_1, window_bounds = array<i64: 16, 32>}, {pipeline_mode = #tpu.pipeline_mode<synchronous>, transform_indices = @transform_2, window_bounds = array<i64: 2, 32>}, {transform_indices = @transform_3, window_bounds = array<i64: 16, 32>}]} {
    %c0 = arith.constant 0 : index
    %c0_0 = arith.constant 0 : index
    %0 = vector.load %arg1[%c0, %c0_0] : memref<16x32xf32, #tpu.memory_space<vmem>>, vector<16x32xf32>
    %c0_1 = arith.constant 0 : index
    %c0_2 = arith.constant 0 : index
    %1 = vector.load %arg2[%c0_1, %c0_2] : memref<16x32xf32, #tpu.memory_space<vmem>>, vector<16x32xf32>
    %2 = arith.addf %0, %1 : vector<16x32xf32>
    %cst = arith.constant dense<0.000000e+00> : vector<16xf32>
    %3 = vector.multi_reduction <add>, %2, %cst [1] : vector<16x32xf32> to vector<16xf32>
    %4 = vector.shape_cast %3 : vector<16xf32> to vector<16x1xf32>
    %cst_3 = arith.constant 3.125000e-02 : f32
    %5 = vector.broadcast %cst_3 : f32 to vector<16x1xf32>
    %6 = arith.mulf %4, %5 : vector<16x1xf32>
    %7 = vector.broadcast %6 : vector<16x1xf32> to vector<16x32xf32>
    %8 = arith.subf %2, %7 : vector<16x32xf32>
    %9 = arith.mulf %8, %8 : vector<16x32xf32>
    %cst_4 = arith.constant dense<0.000000e+00> : vector<16xf32>
    %10 = vector.multi_reduction <add>, %9, %cst_4 [1] : vector<16x32xf32> to vector<16xf32>
    %11 = vector.shape_cast %10 : vector<16xf32> to vector<16x1xf32>
    %cst_5 = arith.constant 3.125000e-02 : f32
    %12 = vector.broadcast %cst_5 : f32 to vector<16x1xf32>
    %13 = arith.mulf %11, %12 : vector<16x1xf32>
    %cst_6 = arith.constant 9.99999974E-6 : f32
    %14 = vector.broadcast %cst_6 : f32 to vector<16x1xf32>
    %15 = arith.addf %13, %14 : vector<16x1xf32>
    %16 = math.rsqrt %15 : vector<16x1xf32>
    %c0_7 = arith.constant 0 : index
    %c0_8 = arith.constant 0 : index
    %17 = vector.load %arg3[%c0_7, %c0_8] : memref<2x32xf32, #tpu.memory_space<vmem>>, vector<1x32xf32>
    %c1 = arith.constant 1 : index
    %c0_9 = arith.constant 0 : index
    %18 = vector.load %arg3[%c1, %c0_9] : memref<2x32xf32, #tpu.memory_space<vmem>>, vector<1x32xf32>
    %19 = vector.broadcast %16 : vector<16x1xf32> to vector<16x32xf32>
    %20 = arith.mulf %8, %19 : vector<16x32xf32>
    %21 = vector.broadcast %17 : vector<1x32xf32> to vector<16x32xf32>
    %22 = arith.mulf %20, %21 : vector<16x32xf32>
    %23 = vector.broadcast %18 : vector<1x32xf32> to vector<16x32xf32>
    %24 = arith.addf %22, %23 : vector<16x32xf32>
    %c0_10 = arith.constant 0 : index
    %c0_11 = arith.constant 0 : index
    %25 = vector.load %arg4[%c0_10, %c0_11] : memref<16x32xf32, #tpu.memory_space<vmem>>, vector<16x32xf32>
    tpu.vector_store %arg4[%c0_10, %c0_11], %24 {strides = array<i32>} : memref<16x32xf32, #tpu.memory_space<vmem>>, vector<16x32xf32>,
    return
  }
  func.func @transform_0(%arg0: i32) -> (i32, i32) {
    %c0_i32 = arith.constant 0 : i32
    %c0_i32_0 = arith.constant 0 : i32
    return %arg0, %c0_i32 : i32, i32
  }
  func.func @transform_1(%arg0: i32) -> (i32, i32) {
    %c0_i32 = arith.constant 0 : i32
    %c0_i32_0 = arith.constant 0 : i32
    return %arg0, %c0_i32 : i32, i32
  }
  func.func @transform_2(%arg0: i32) -> (i32, i32) {
    %c0_i32 = arith.constant 0 : i32
    %c0_i32_0 = arith.constant 0 : i32
    %c0_i32_1 = arith.constant 0 : i32
    return %c0_i32, %c0_i32_0 : i32, i32
  }
  func.func @transform_3(%arg0: i32) -> (i32, i32) {
    %c0_i32 = arith.constant 0 : i32
    %c0_i32_0 = arith.constant 0 : i32
    return %arg0, %c0_i32 : i32, i32
  }
}

</mosaic_0001>

<bundles_post_ra>
// kernel: tpu_custom_call.1
= control target key start
LH: loop header
LB: loop body
LE: loop exit
PB: predicated region body
PF: predicated region fallthrough
CT: control target
= control target key end

     0   :  { %8 = vsyncpa [#allocation3], 0  ;;  %s275_s0 = inlined_call_operand.hbm [shape: f32[16,32], index: 0, kind: input, shape index: {}]   ;;  %s276_s1 = inlined_call_operand.hbm [shape: f32[16,32], index: 1, kind: input, shape index: {}]   ;;  %s277_s2 = inlined_call_operand.vmem [shape: f32[2,32], index: 2, kind: input, shape index: {}]   ;;  %s278_s3 = inlined_call_operand.hbm [shape: f32[16,32], index: 3, kind: output, shape index: {}]  }
   0x1   :  { %9 = vsyncpa [#allocation6], 0 }
   0x2   :  { %10 = vsyncpa [#allocation4], 0  ;;  %s193_s12 = smov [#allocation2]   ;;  %s121_s16 = scalar_lea.hbm %s275_s0, 256 }
   0x3   :  { %s16_s13 = sshll.u32 %s193_s12, 4  ;;  %p122_p0 = scmp.ne.s32.totalorder %s275_s0, %s121_s16  ;;  %s17_s13 = int_to_ptr.vmem [resolvable:$true] %s16_s13 }
   0x4   :  { %p125_p1 = scmp.lt.u32.totalorder %s121_s16, %s275_s0 }
   0x6   :  { %p127_p2 = pnand %p125_p1, %p122_p0 }
   0x8   :  { %130 = shalt.err (!%p127_p2)
}
   0x9   :  { %s131_s21 = scalar_lea.vmem %s17_s13, 256  ;;  %p136_p4 = scmp.lt.s32.totalorder %s17_s13, %s17_s13 }
   0xa   :  { %p132_p3 = scmp.ne.s32.totalorder %s17_s13, %s131_s21  ;;  %p137_p5 = scmp.lt.s32.totalorder %s131_s21, %s131_s21 }
   0xc   :  { %p138_p6 = por %p137_p5, %p136_p4 }
   0xe   :  { %p139_p7 = pnand %p138_p6, %p132_p3 }
  0x10   :  { %142 = shalt.err (!%p139_p7)
}
  0x11   :  { %s194_s22 = smov 128   ;;  %s195_s23 = smov 8  }
  0x12   :  { %22 = dma.hbm_to_vmem [thread:$0]  %s275_s0, 256, %s17_s13, [#allocation3], %s194_s22, %s194_s22, %s195_s23  }
  0x13   :  { %s196_s26 = smov [#allocation5]   ;;  %s143_s30 = scalar_lea.hbm %s276_s1, 256 }
  0x14   :  { %s28_s27 = sshll.u32 %s196_s26, 4  ;;  %p144_p8 = scmp.ne.s32.totalorder %s276_s1, %s143_s30  ;;  %s29_s27 = int_to_ptr.vmem [resolvable:$true] %s28_s27 }
  0x15   :  { %p147_p9 = scmp.lt.u32.totalorder %s143_s30, %s276_s1 }
  0x17   :  { %p149_p10 = pnand %p147_p9, %p144_p8 }
  0x19   :  { %152 = shalt.err (!%p149_p10)
}
  0x1a   :  { %s153_s8 = scalar_lea.vmem %s29_s27, 256  ;;  %p158_p12 = scmp.lt.s32.totalorder %s29_s27, %s29_s27 }
  0x1b   :  { %p154_p11 = scmp.ne.s32.totalorder %s29_s27, %s153_s8  ;;  %p159_p13 = scmp.lt.s32.totalorder %s153_s8, %s153_s8 }
  0x1d   :  { %p160_p0 = por %p159_p13, %p158_p12 }
  0x1f   :  { %p161_p1 = pnand %p160_p0, %p154_p11 }
  0x21   :  { %164 = shalt.err (!%p161_p1)
}
  0x22   :  { %34 = dma.hbm_to_vmem [thread:$0]  %s276_s1, 256, %s29_s27, [#allocation6], %s194_s22, %s194_s22, %s195_s23  }
  0x23   :  { %187 = dma.done.wait [#allocation3], 256  }
  0x24   :  { %188 = vsyncadd [#allocation3], 4294967040 }
  0x25   :  { %189 = dma.done.wait [#allocation6], 256  }
  0x26   :  { %190 = vsyncadd [#allocation6], 4294967040  ;;  %v43_v0 = vld [vmem:[#allocation2] sm:$0xff]  ;;  %v45_v1 = vld [vmem:[#allocation5] sm:$0xff]  ;;  %vm49_vm0 = vcmask 261120   ;;  %s197_s13 = smov [#allocation7]  }
  0x27   :  { %v44_v2 = vld [vmem:[#allocation2 + $0x8] sm:$0xff]  ;;  %v47_v3 = vadd.f32 %v45_v1, %v43_v0  ;;  %v46_v4 = vld [vmem:[#allocation5 + $0x8] sm:$0xff]  ;;  %v110_v25 = vld [vmem:[%s277_s2] ss:$0 sm:$0xff]  ;;  %s97_s14 = sshll.u32 %s197_s13, 4  ;;  %s98_s14 = int_to_ptr.vmem [resolvable:$true] %s97_s14 }
  0x28   :  { %v48_v5 = vadd.f32 %v46_v4, %v44_v2  ;;  %v111_v27 = vld [vmem:[%s277_s2 + $0x1] ss:$0 sm:$0xff]  ;;  %s165_s15 = scalar_lea.vmem %s98_s14, 256  ;;  %p170_p3 = scmp.lt.s32.totalorder %s98_s14, %s98_s14 }
  0x29   :  { %v50_v6 = vsel %vm49_vm0, %v47_v3, 0.0  ;;  %p166_p2 = scmp.ne.s32.totalorder %s98_s14, %s165_s15  ;;  %p171_p4 = scmp.lt.s32.totalorder %s165_s15, %s165_s15 }
  0x2a   :  { %51 = vadd.xlane.f32.xlu0 %v50_v6  ;;  %v53_v7 = vsel %vm49_vm0, %v48_v5, 0.0 }
  0x2b   :  { %p172_p5 = por %p171_p4, %p170_p3 }
  0x2d   :  { %p173_p6 = pnand %p172_p5, %p166_p2 }
  0x2e   :  { %54 = vadd.xlane.f32.xlu0 %v53_v7 }
  0xb7   :  { %v52_v8 = vpop.xlane.xlu0 %51 }
  0xb8   :  { %v56_v9 = vmul.f32 0.03125, %v52_v8 }
  0xba   :  { %v58_v10 = vsub.f32 %v47_v3, %v56_v9 }
  0xbb   :  { %v55_v11 = vpop.xlane.xlu0 %54 }
  0xbc   :  { %v57_v12 = vmul.f32 0.03125, %v55_v11  ;;  %v60_v13 = vmul.f32 %v58_v10, %v58_v10 }
  0xbe   :  { %v59_v14 = vsub.f32 %v48_v5, %v57_v12  ;;  %v62_v15 = vsel %vm49_vm0, %v60_v13, 0.0 }
  0xbf   :  { %63 = vadd.xlane.f32.xlu1 %v62_v15 }
  0xc0   :  { %v61_v16 = vmul.f32 %v59_v14, %v59_v14 }
  0xc2   :  { %v65_v17 = vsel %vm49_vm0, %v61_v16, 0.0 }
  0xc3   :  { %66 = vadd.xlane.f32.xlu1 %v65_v17 }
 0x14c   :  { %v64_v18 = vpop.xlane.xlu1 %63 }
 0x14d   :  { %v68_v19 = vmul.f32 0.03125, %v64_v18 }
 0x14f   :  { %v70_v20 = vadd.f32 1e-05, %v68_v19 }
 0x150   :  { %v67_v21 = vpop.xlane.xlu1 %66 }
 0x151   :  { %117 = vrsqrt.f32 %v70_v20  ;;  %v69_v22 = vmul.f32 0.03125, %v67_v21 }
 0x153   :  { %v71_v23 = vadd.f32 1e-05, %v69_v22 }
 0x155   :  { %119 = vrsqrt.f32 %v71_v23 }
 0x15b   :  { %v118_v24 = vpop.eup %117 }
 0x15c   :  { %v76_v26 = vmul.f32 %v118_v24, %v58_v10 }
 0x15e   :  { %v82_v28 = vmul.f32 %v110_v25, %v76_v26 }
 0x15f   :  { %v120_v29 = vpop.eup %119 }
 0x160   :  { %v77_v30 = vmul.f32 %v120_v29, %v59_v14  ;;  %v88_v31 = vadd.f32 %v111_v27, %v82_v28 }
 0x162   :  { %v83_v32 = vmul.f32 %v110_v25, %v77_v30  ;;  %90 = vst.msk [vmem:[#allocation7] sm:$0xff] %vm49_vm0, %v88_v31 }
 0x164   :  { %v89_v33 = vadd.f32 %v111_v27, %v83_v32 }
 0x166   :  { %91 = vst.msk [vmem:[#allocation7 + $0x8] sm:$0xff] %vm49_vm0, %v89_v33 }
 0x167   :  { %176 = shalt.err (!%p173_p6)
}
 0x168   :  { %s177_s17 = scalar_lea.hbm %s278_s3, 256 }
 0x169   :  { %p178_p7 = scmp.ne.s32.totalorder %s278_s3, %s177_s17  ;;  %p181_p8 = scmp.lt.u32.totalorder %s177_s17, %s278_s3 }
 0x16b   :  { %p183_p9 = pnand %p181_p8, %p178_p7 }
 0x16d   :  { %186 = shalt.err (!%p183_p9)
}
 0x16e   :  { %103 = dma.vmem_to_hbm [thread:$0]  %s98_s14, 256, %s278_s3, [#allocation4], %s194_s22, %s194_s22, %s195_s23  }
 0x16f   :  { %191 = dma.done.wait [#allocation4], 256  }
 0x170   :  { %192 = vsyncadd [#allocation4], 4294967040 }
 0x171   :  { %107 = vsyncpa [#allocation3], 1 }
 0x172   :  { %108 = vsyncpa [#allocation6], 1 }
 0x173   :  { %109 = vsyncpa [#allocation4], 1 }

</bundles_post_ra>
